<compile_context>
chip_gen: v7x
topology: tpu7x:2x2x1
jax: 0.10.0
libtpu: 0.0.40
codegen_flags: <defaults>
</compile_context>

<pallas_src>
import functools

import jax
import jax.numpy as jnp
from jax.experimental import pallas as pl
from jax.experimental.pallas import tpu as pltpu


def _round_up(n, m):
    return ((n + m - 1) // m) * m


def _tensorcores_per_chip():
    """2 TCs on v7x and megacore chips (v4/v5p); 1 on v5e/v6e. Best effort."""
    try:
        kind = jax.devices()[0].device_kind.lower()
    except Exception:
        return 1
    return 2 if any(tag in kind for tag in ("v7", "v4", "v5p")) else 1


def _pick_tm(batch, cores, *, max_chunk=8, max_waste=0.25):
    """Pick the batch-tile row count (a multiple of 128, capped at 1024).

    Single tile on 1-TC chips when the batch fits; >= `cores` tiles on
    multi-TC chips so every core gets a grid step.  The tile is shrunk if
    padding to a tile multiple would waste more than ~25% of the batch.
    """
    n = -(-batch // 128)                       # batch size in 128-row chunks
    if cores >= 2 and n >= 2:
        cap = min(max_chunk, -(-n // cores))   # aim for >= `cores` tiles
    else:
        cap = min(max_chunk, n)                # single tile if it fits
    budget = int(max_waste * n)
    best = 1
    for cpt in range(1, cap + 1):
        waste = (-(-n // cpt)) * cpt - n
        if waste <= budget:
            best = cpt                         # largest feasible chunk count
    return 128 * best


def _make_mlp_kernel(num_layers, order):
    """(Linear -> ReLU) x num_layers in natural [rows, features] layout."""

    def kernel(*refs):
        x_ref = refs[0]            # (tm, order)
        o_ref = refs[-1]           # (tm, num_bases)
        p_refs = refs[1:-1]        # (w0_t, b0, w1_t, b1, ...), w_t: (in, out)

        h = x_ref[...].astype(jnp.float32)
        for layer in range(num_layers):
            w_ref = p_refs[2 * layer]       # (in, out) pre-transposed
            b_ref = p_refs[2 * layer + 1]   # (1, out)
            if layer == 0 and order <= 8:
                # K = order is tiny: an MXU pass would run at ~1% utilization,
                # so do `order` rank-1 VPU broadcast-FMAs.  (tm,1) x (1,out)
                # are the cheap keepdims-style sublane/lane broadcasts.
                acc = h[:, 0:1] * w_ref[0:1, :] + b_ref[...]
                for k in range(1, order):
                    acc = acc + h[:, k:k + 1] * w_ref[k:k + 1, :]
                h = acc
            else:
                h = (
                    jnp.dot(h, w_ref[...], preferred_element_type=jnp.float32)
                    + b_ref[...]
                )
            h = jnp.maximum(h, 0.0)  # final ReLU matches the torch Sequential
        o_ref[...] = h.astype(o_ref.dtype)

    return kernel


@functools.partial(jax.jit, static_argnames=("tm",))
def concept_nn_bases_nary(x, params, *, tm=None):
    """Forward of ConceptNNBasesNary (dropout=0, batchnorm=False).

    x: [B, order] float32 (natural layout — no wrapper transpose).
    params: list of (w, b) per layer in torch Linear layout: w [out, in],
            b [out].
    Returns [B, num_bases] float32.
    """
    B, order = x.shape
    num_layers = len(params)
    num_bases = params[-1][0].shape[0]

    if tm is None:
        tm = _pick_tm(B, _tensorcores_per_chip())
    else:
        tm = max(128, _round_up(int(tm), 128))

    b_pad = _round_up(B, tm)
    x_in = x.astype(jnp.float32)
    if b_pad != B:
        # Ragged batch: zero-pad rows; padded rows compute relu(bias) values
        # that are sliced off below and never returned to the caller.
        x_in = jnp.pad(x_in, ((0, b_pad - B), (0, 0)))

    # Weights go in pre-transposed to (in, out) and biases as (1, out) rows so
    # neither the VPU nor the MXU path needs any in-kernel transpose.  These
    # are one-off reshapes of <8 KiB of parameters, not per-element HBM passes.
    flat_params = []
    in_specs = [pl.BlockSpec((tm, order), lambda i: (i, 0))]
    for w, b in params:
        w_t = w.T.astype(jnp.float32)                 # (in, out)
        b_row = b.reshape(1, -1).astype(jnp.float32)  # (1, out)
        flat_params.extend([w_t, b_row])
        # Whole-array blocks with constant index_map: block index never
        # changes, so these tiny operands are not re-DMA'd per grid step.
        in_specs.append(pl.BlockSpec(tuple(w_t.shape), lambda i: (0, 0)))
        in_specs.append(pl.BlockSpec(tuple(b_row.shape), lambda i: (0, 0)))

    flops = 2 * b_pad * sum(int(w.shape[0]) * int(w.shape[1]) for w, _ in params)
    bytes_accessed = 4 * (
        order * b_pad
        + num_bases * b_pad
        + sum(int(w.size) + int(b.size) for w, b in params)
    )

    out = pl.pallas_call(
        _make_mlp_kernel(num_layers, order),
        out_shape=jax.ShapeDtypeStruct((b_pad, num_bases), jnp.float32),
        grid_spec=pltpu.PrefetchScalarGridSpec(
            num_scalar_prefetch=0,
            grid=(b_pad // tm,),
            in_specs=in_specs,
            out_specs=pl.BlockSpec((tm, num_bases), lambda i: (i, 0)),
        ),
        compiler_params=pltpu.CompilerParams(
            # "parallel" lets megacore chips (v4/v5p/v7x) shard the batch axis
            # across TensorCores and is a no-op on 1-TC chips; it is portable
            # across all generations (pltpu.CORE_PARALLEL is a v7x-only
            # experiment and not required for correctness).
            dimension_semantics=("parallel",),
        ),
        cost_estimate=pl.CostEstimate(
            flops=flops, transcendentals=0, bytes_accessed=bytes_accessed
        ),
    )(x_in, *flat_params)

    return out if b_pad == B else out[:B]


def init_params(key, order, hidden_dims, num_bases):
    """PyTorch-Linear-style init (uniform +-1/sqrt(fan_in)), torch layout.

    Weights stored as [out, in], biases as [out].
    """
    dims = [order] + list(hidden_dims) + [num_bases]
    params = []
    for fan_in, fan_out in zip(dims[:-1], dims[1:]):
        key, kw, kb = jax.random.split(key, 3)
        bound = 1.0 / (fan_in ** 0.5)
        w = jax.random.uniform(kw, (fan_out, fan_in), jnp.float32, -bound, bound)
        b = jax.random.uniform(kb, (fan_out,), jnp.float32, -bound, bound)
        params.append((w, b))
    return params


def reference_forward(x, params):
    """Pure-JAX reference of the PyTorch module's forward."""
    h = x
    for w, b in params:
        h = jnp.maximum(h @ w.T + b, 0.0)
    return h


if __name__ == "__main__":
    # Module hyperparameters (small, consistent with the PyTorch __init__).
    order = 2            # N-ary interaction order -> input feature dim
    hidden_dims = (32, 32)
    num_bases = 16
    batch = 256

    key = jax.random.PRNGKey(0)
    key, kx = jax.random.split(key)
    x = jax.random.normal(kx, (batch, order), dtype=jnp.float32)
    params = init_params(key, order, hidden_dims, num_bases)

    # Default (chip-aware tile) path.
    out = jax.block_until_ready(concept_nn_bases_nary(x, params))
    ref = reference_forward(x, params)
    assert out.shape == (batch, num_bases)
    assert jnp.allclose(out, ref, atol=1e-5, rtol=1e-5), "mismatch vs reference"

    # Explicit multi-tile path (grid > 1), independent of detected chip type.
    out_mt = jax.block_until_ready(concept_nn_bases_nary(x, params, tm=128))
    assert jnp.allclose(out_mt, ref, atol=1e-5, rtol=1e-5), "multi-tile mismatch"

    # Ragged batch (not a multiple of 128): zero-pad + slice path.
    x_rag = x[:200]
    out_rag = jax.block_until_ready(concept_nn_bases_nary(x_rag, params))
    ref_rag = reference_forward(x_rag, params)
    assert out_rag.shape == (200, num_bases)
    assert jnp.allclose(out_rag, ref_rag, atol=1e-5, rtol=1e-5), "ragged mismatch"

    # TODO(synk): batchnorm=True (nn.BatchNorm1d) and dropout>0 branches are
    # not implemented; the module defaults (batchnorm=False, dropout=0.0) are
    # what this kernel reproduces.
    print("KERNEL_OK")
</pallas_src>

<mosaic_0001>
module attributes {stable_mosaic.version = 11 : i64} {
  func.func @kernel(%arg0: i32, %arg1: memref<256x2xf32, #tpu.memory_space<vmem>>, %arg2: memref<2x32xf32, #tpu.memory_space<vmem>>, %arg3: memref<1x32xf32, #tpu.memory_space<vmem>>, %arg4: memref<32x32xf32, #tpu.memory_space<vmem>>, %arg5: memref<1x32xf32, #tpu.memory_space<vmem>>, %arg6: memref<32x16xf32, #tpu.memory_space<vmem>>, %arg7: memref<1x16xf32, #tpu.memory_space<vmem>>, %arg8: memref<256x16xf32, #tpu.memory_space<vmem>>) attributes {dimension_semantics = [#tpu.dimension_semantics<parallel>], iteration_bounds = array<i64: 1>, scalar_prefetch = 0 : i64, scratch_operands = 0 : i64, tpu.core_type = #tpu.core_type<tc>, window_params = [{transform_indices = @transform_0, window_bounds = array<i64: 256, 2>}, {pipeline_mode = #tpu.pipeline_mode<synchronous>, transform_indices = @transform_1, window_bounds = array<i64: 2, 32>}, {pipeline_mode = #tpu.pipeline_mode<synchronous>, transform_indices = @transform_2, window_bounds = array<i64: 1, 32>}, {pipeline_mode = #tpu.pipeline_mode<synchronous>, transform_indices = @transform_3, window_bounds = array<i64: 32, 32>}, {pipeline_mode = #tpu.pipeline_mode<synchronous>, transform_indices = @transform_4, window_bounds = array<i64: 1, 32>}, {pipeline_mode = #tpu.pipeline_mode<synchronous>, transform_indices = @transform_5, window_bounds = array<i64: 32, 16>}, {pipeline_mode = #tpu.pipeline_mode<synchronous>, transform_indices = @transform_6, window_bounds = array<i64: 1, 16>}, {transform_indices = @transform_7, window_bounds = array<i64: 256, 16>}]} {
    %c0 = arith.constant 0 : index
    %c0_0 = arith.constant 0 : index
    %0 = vector.load %arg1[%c0, %c0_0] : memref<256x2xf32, #tpu.memory_space<vmem>>, vector<256x2xf32>
    %1 = vector.extract_strided_slice %0 {offsets = [0, 0], sizes = [256, 1], strides = [1, 1]} : vector<256x2xf32> to vector<256x1xf32>
    %c0_1 = arith.constant 0 : index
    %c0_2 = arith.constant 0 : index
    %2 = vector.load %arg2[%c0_1, %c0_2] : memref<2x32xf32, #tpu.memory_space<vmem>>, vector<1x32xf32>
    %3 = vector.broadcast %1 : vector<256x1xf32> to vector<256x32xf32>
    %4 = vector.broadcast %2 : vector<1x32xf32> to vector<256x32xf32>
    %5 = arith.mulf %3, %4 : vector<256x32xf32>
    %c0_3 = arith.constant 0 : index
    %c0_4 = arith.constant 0 : index
    %6 = vector.load %arg3[%c0_3, %c0_4] : memref<1x32xf32, #tpu.memory_space<vmem>>, vector<1x32xf32>
    %7 = vector.broadcast %6 : vector<1x32xf32> to vector<256x32xf32>
    %8 = arith.addf %5, %7 : vector<256x32xf32>
    %9 = vector.extract_strided_slice %0 {offsets = [0, 1], sizes = [256, 1], strides = [1, 1]} : vector<256x2xf32> to vector<256x1xf32>
    %c1 = arith.constant 1 : index
    %c0_5 = arith.constant 0 : index
    %10 = vector.load %arg2[%c1, %c0_5] : memref<2x32xf32, #tpu.memory_space<vmem>>, vector<1x32xf32>
    %11 = vector.broadcast %9 : vector<256x1xf32> to vector<256x32xf32>
    %12 = vector.broadcast %10 : vector<1x32xf32> to vector<256x32xf32>
    %13 = arith.mulf %11, %12 : vector<256x32xf32>
    %14 = arith.addf %8, %13 : vector<256x32xf32>
    %cst = arith.constant 0.000000e+00 : f32
    %15 = vector.broadcast %cst : f32 to vector<256x32xf32>
    %16 = arith.maximumf %14, %15 : vector<256x32xf32>
    %c0_6 = arith.constant 0 : index
    %c0_7 = arith.constant 0 : index
    %17 = vector.load %arg4[%c0_6, %c0_7] : memref<32x32xf32, #tpu.memory_space<vmem>>, vector<32x32xf32>
    %cst_8 = arith.constant dense<0.000000e+00> : vector<256x32xf32>
    %18 = tpu.matmul %16, %17, %cst_8 {dimension_numbers = #tpu.dot_dimension_numbers<[1], [0], [0], [1], [0, 0, 1, 1], [], []>} : vector<256x32xf32>, vector<32x32xf32>, vector<256x32xf32> -> vector<256x32xf32>
    %c0_9 = arith.constant 0 : index
    %c0_10 = arith.constant 0 : index
    %19 = vector.load %arg5[%c0_9, %c0_10] : memref<1x32xf32, #tpu.memory_space<vmem>>, vector<1x32xf32>
    %20 = vector.broadcast %19 : vector<1x32xf32> to vector<256x32xf32>
    %21 = arith.addf %18, %20 : vector<256x32xf32>
    %cst_11 = arith.constant 0.000000e+00 : f32
    %22 = vector.broadcast %cst_11 : f32 to vector<256x32xf32>
    %23 = arith.maximumf %21, %22 : vector<256x32xf32>
    %c0_12 = arith.constant 0 : index
    %c0_13 = arith.constant 0 : index
    %24 = vector.load %arg6[%c0_12, %c0_13] : memref<32x16xf32, #tpu.memory_space<vmem>>, vector<32x16xf32>
    %cst_14 = arith.constant dense<0.000000e+00> : vector<256x16xf32>
    %25 = tpu.matmul %23, %24, %cst_14 {dimension_numbers = #tpu.dot_dimension_numbers<[1], [0], [0], [1], [0, 0, 1, 1], [], []>} : vector<256x32xf32>, vector<32x16xf32>, vector<256x16xf32> -> vector<256x16xf32>
    %c0_15 = arith.constant 0 : index
    %c0_16 = arith.constant 0 : index
    %26 = vector.load %arg7[%c0_15, %c0_16] : memref<1x16xf32, #tpu.memory_space<vmem>>, vector<1x16xf32>
    %27 = vector.broadcast %26 : vector<1x16xf32> to vector<256x16xf32>
    %28 = arith.addf %25, %27 : vector<256x16xf32>
    %cst_17 = arith.constant 0.000000e+00 : f32
    %29 = vector.broadcast %cst_17 : f32 to vector<256x16xf32>
    %30 = arith.maximumf %28, %29 : vector<256x16xf32>
    %c0_18 = arith.constant 0 : index
    %c0_19 = arith.constant 0 : index
    %31 = vector.load %arg8[%c0_18, %c0_19] : memref<256x16xf32, #tpu.memory_space<vmem>>, vector<256x16xf32>
    tpu.vector_store %arg8[%c0_18, %c0_19], %30 {strides = array<i32>} : memref<256x16xf32, #tpu.memory_space<vmem>>, vector<256x16xf32>,
    return
  }
  func.func @transform_0(%arg0: i32) -> (i32, i32) {
    %c0_i32 = arith.constant 0 : i32
    %c0_i32_0 = arith.constant 0 : i32
    return %arg0, %c0_i32 : i32, i32
  }
  func.func @transform_1(%arg0: i32) -> (i32, i32) {
    %c0_i32 = arith.constant 0 : i32
    %c0_i32_0 = arith.constant 0 : i32
    %c0_i32_1 = arith.constant 0 : i32
    return %c0_i32, %c0_i32_0 : i32, i32
  }
  func.func @transform_2(%arg0: i32) -> (i32, i32) {
    %c0_i32 = arith.constant 0 : i32
    %c0_i32_0 = arith.constant 0 : i32
    %c0_i32_1 = arith.constant 0 : i32
    return %c0_i32, %c0_i32_0 : i32, i32
  }
  func.func @transform_3(%arg0: i32) -> (i32, i32) {
    %c0_i32 = arith.constant 0 : i32
    %c0_i32_0 = arith.constant 0 : i32
    %c0_i32_1 = arith.constant 0 : i32
    return %c0_i32, %c0_i32_0 : i32, i32
  }
  func.func @transform_4(%arg0: i32) -> (i32, i32) {
    %c0_i32 = arith.constant 0 : i32
    %c0_i32_0 = arith.constant 0 : i32
    %c0_i32_1 = arith.constant 0 : i32
    return %c0_i32, %c0_i32_0 : i32, i32
  }
  func.func @transform_5(%arg0: i32) -> (i32, i32) {
    %c0_i32 = arith.constant 0 : i32
    %c0_i32_0 = arith.constant 0 : i32
    %c0_i32_1 = arith.constant 0 : i32
    return %c0_i32, %c0_i32_0 : i32, i32
  }
  func.func @transform_6(%arg0: i32) -> (i32, i32) {
    %c0_i32 = arith.constant 0 : i32
    %c0_i32_0 = arith.constant 0 : i32
    %c0_i32_1 = arith.constant 0 : i32
    return %c0_i32, %c0_i32_0 : i32, i32
  }
  func.func @transform_7(%arg0: i32) -> (i32, i32) {
    %c0_i32 = arith.constant 0 : i32
    %c0_i32_0 = arith.constant 0 : i32
    return %arg0, %c0_i32 : i32, i32
  }
}

</mosaic_0001>

<bundles_post_ra>
// kernel: concept_nn_bases_nary.1
= control target key start
LH: loop header
LB: loop body
LE: loop exit
PB: predicated region body
PF: predicated region fallthrough
CT: control target
= control target key end

     0   :  { %v1594_v0 = vmov 1   ;;  %v1595_v7 = vmov 0   ;;  %vm534_vm0 = vcmask 261120   ;;  %vm1252_vm1 = vcmask 130048   ;;  %s2189_s0 = inlined_call_operand.vmem [shape: f32[256,2], index: 0, kind: input, shape index: {}]   ;;  %s2190_s3 = inlined_call_operand.vmem [shape: f32[32,32], index: 3, kind: input, shape index: {}]   ;;  %s2191_s1 = inlined_call_operand.vmem [shape: f32[2,32], index: 1, kind: input, shape index: {}]   ;;  %s2192_s2 = inlined_call_operand.vmem [shape: f32[1,32], index: 2, kind: input, shape index: {}]   ;;  %s2193_s5 = inlined_call_operand.vmem [shape: f32[32,16], index: 5, kind: input, shape index: {}]   ;;  %s2194_s4 = inlined_call_operand.vmem [shape: f32[1,32], index: 4, kind: input, shape index: {}]   ;;  %s2195_s6 = inlined_call_operand.vmem [shape: f32[1,16], index: 6, kind: input, shape index: {}]   ;;  %s2196_s7 = inlined_call_operand.vmem [shape: f32[256,16], index: 7, kind: output, shape index: {}]  }
   0x1   :  { %1562 = vset.pattern.permute.xlu0 %v1594_v0  ;;  %1560 = vset.pattern.permute.xlu1 %v1594_v0  ;;  %v28_v1 = vld [vmem:[%s2189_s0 + $0x10] sm:$0xff]  ;;  %v26_v2 = vld [vmem:[%s2189_s0] sm:$0xff]  ;;  %v27_v4 = vld [vmem:[%s2189_s0 + $0x8] sm:$0xff] }
   0x2   :  { %304 = vperm.xlu0 %1562, %v28_v1   ;;  %296 = vperm.xlu1 %1560, %v26_v2   ;;  %v32_v3 = vld [vmem:[%s2189_s0 + $0x30] sm:$0xff]  ;;  %v29_v6 = vld [vmem:[%s2189_s0 + $0x18] sm:$0xff]  ;;  %v30_v10 = vld [vmem:[%s2189_s0 + $0x20] sm:$0xff] }
   0x3   :  { %v36_v5 = vld [vmem:[%s2189_s0 + $0x50] sm:$0xff]  ;;  %v31_v13 = vld [vmem:[%s2189_s0 + $0x28] sm:$0xff]  ;;  %v33_v14 = vld [vmem:[%s2189_s0 + $0x38] sm:$0xff] }
   0x4   :  { %v40_v8 = vld [vmem:[%s2189_s0 + $0x70] sm:$0xff]  ;;  %v523_v15 = vld [vmem:[%s2190_s3] sm:$0xff]  ;;  %v524_v16 = vld [vmem:[%s2190_s3 + $0x8] sm:$0xff] }
   0x5   :  { %v44_v9 = vld [vmem:[%s2189_s0 + $0x90] sm:$0xff]  ;;  %v1542_v17 = vpack.c.bf16 %v524_v16, %v523_v15  ;;  %v526_v19 = vld [vmem:[%s2190_s3 + $0x18] sm:$0xff]  ;;  %v34_v21 = vld [vmem:[%s2189_s0 + $0x40] sm:$0xff] }
   0x6   :  { %320 = vperm.xlu0 %1562, %v32_v3   ;;  %300 = vperm.xlu1 %1560, %v27_v4   ;;  %v48_v11 = vld [vmem:[%s2189_s0 + $0xb0] sm:$0xff]  ;;  %v35_v22 = vld [vmem:[%s2189_s0 + $0x48] sm:$0xff]  ;;  %v37_v24 = vld [vmem:[%s2189_s0 + $0x58] sm:$0xff] }
   0x7   :  { %v52_v12 = vld [vmem:[%s2189_s0 + $0xd0] sm:$0xff]  ;;  %1543 = vmatprep.subr.bf16.mxu0 %v1542_v17  ;;  %v39_v23 = vld [vmem:[%s2189_s0 + $0x68] sm:$0xff]  ;;  %v38_v26 = vld [vmem:[%s2189_s0 + $0x60] sm:$0xff] }
   0x8   :  { %v525_v18 = vld [vmem:[%s2190_s3 + $0x10] sm:$0xff]  ;;  %1545 = vmatpush3.bf16.msra.mxu0 %v1542_v17  ;;  %v43_v25 = vld [vmem:[%s2189_s0 + $0x88] sm:$0xff]  ;;  %v41_v29 = vld [vmem:[%s2189_s0 + $0x78] sm:$0xff] }
   0x9   :  { %v1546_v20 = vpack.c.bf16 %v526_v19, %v525_v18  ;;  %v47_v27 = vld [vmem:[%s2189_s0 + $0xa8] sm:$0xff]  ;;  %v42_v31 = vld [vmem:[%s2189_s0 + $0x80] sm:$0xff]  ;;  %v56_v32 = vld [vmem:[%s2189_s0 + $0xf0] sm:$0xff] }
   0xa   :  { %336 = vperm.xlu0 %1562, %v36_v5   ;;  %1561 = vset.pattern.permute.xlu1 %v1595_v7  ;;  %v51_v28 = vld [vmem:[%s2189_s0 + $0xc8] sm:$0xff]  ;;  %v45_v33 = vld [vmem:[%s2189_s0 + $0x98] sm:$0xff]  ;;  %v46_v34 = vld [vmem:[%s2189_s0 + $0xa0] sm:$0xff] }
   0xb   :  { %76 = vperm.xlu1 %1561, %v29_v6   ;;  %1547 = vmatprep.subr.bf16.mxu0 %v1546_v20  ;;  %v1734_v30 = vld [vmem:[%s2189_s0 + $0xe8] sm:$0xff]  ;;  %v49_v35 = vld [vmem:[%s2189_s0 + $0xb8] sm:$0xff]  ;;  %v50_v42 = vld [vmem:[%s2189_s0 + $0xc0] sm:$0xff] }
   0xc   :  { %1549 = vmatpush3.bf16.msra.mxu0 %v1546_v20  ;;  %v53_v48 = vld [vmem:[%s2189_s0 + $0xd8] sm:$0xff]  ;;  %v1785_v52 = vld [vmem:[%s2191_s1 + $0x1] ss:$0 sm:$0xff]  ;;  %v1790_v53 = vld [vmem:[%s2191_s1] ss:$0 sm:$0xff] }
   0xd   :  { %v1797_v56 = vld [vmem:[%s2192_s2] ss:$0 sm:$0xff] }
   0xe   :  { %352 = vperm.xlu0 %1562, %v40_v8   ;;  %v54_v61 = vld [vmem:[%s2189_s0 + $0xe0] sm:$0xff] }
   0xf   :  { %1563 = vset.pattern.permute.xlu1 %v1594_v0 }
  0x10   :  { %308 = vperm.xlu1 %1563, %v29_v6  }
  0x12   :  { %368 = vperm.xlu0 %1562, %v44_v9  }
  0x14   :  { %1564 = vset.pattern.permute.xlu1 %v1595_v7 }
  0x15   :  { %81 = vperm.xlu1 %1564, %v30_v10  }
  0x16   :  { %384 = vperm.xlu0 %1562, %v48_v11  }
  0x19   :  { %1565 = vset.pattern.permute.xlu1 %v1594_v0 }
  0x1a   :  { %400 = vperm.xlu0 %1562, %v52_v12   ;;  %312 = vperm.xlu1 %1565, %v30_v10  }
  0x1e   :  { %1587 = vset.pattern.permute.xlu0 %v1595_v7  ;;  %316 = vperm.xlu1 %1565, %v31_v13  }
  0x1f   :  { %61 = vperm.xlu0 %1587, %v26_v2  }
  0x22   :  { %1566 = vset.pattern.permute.xlu1 %v1595_v7 }
  0x23   :  { %66 = vperm.xlu0 %1587, %v27_v4   ;;  %96 = vperm.xlu1 %1566, %v33_v14  }
  0x27   :  { %71 = vperm.xlu0 %1587, %v28_v1   ;;  %1567 = vset.pattern.permute.xlu1 %v1594_v0 }
  0x28   :  { %324 = vperm.xlu1 %1567, %v33_v14  }
  0x2b   :  { %86 = vperm.xlu0 %1587, %v31_v13  }
  0x2c   :  { %1568 = vset.pattern.permute.xlu1 %v1595_v7 }
  0x2d   :  { %101 = vperm.xlu1 %1568, %v34_v21  }
  0x2f   :  { %91 = vperm.xlu0 %1587, %v32_v3  }
  0x31   :  { %1569 = vset.pattern.permute.xlu1 %v1594_v0 }
  0x32   :  { %328 = vperm.xlu1 %1569, %v34_v21  }
  0x33   :  { %106 = vperm.xlu0 %1587, %v35_v22  }
  0x36   :  { %332 = vperm.xlu1 %1569, %v35_v22  }
  0x37   :  { %111 = vperm.xlu0 %1587, %v36_v5  }
  0x3a   :  { %1570 = vset.pattern.permute.xlu1 %v1595_v7 }
  0x3b   :  { %126 = vperm.xlu0 %1587, %v39_v23   ;;  %116 = vperm.xlu1 %1570, %v37_v24  }
  0x3f   :  { %131 = vperm.xlu0 %1587, %v40_v8   ;;  %1571 = vset.pattern.permute.xlu1 %v1594_v0 }
  0x40   :  { %340 = vperm.xlu1 %1571, %v37_v24  }
  0x43   :  { %146 = vperm.xlu0 %1587, %v43_v25  }
  0x44   :  { %1572 = vset.pattern.permute.xlu1 %v1595_v7 }
  0x45   :  { %121 = vperm.xlu1 %1572, %v38_v26  }
  0x47   :  { %151 = vperm.xlu0 %1587, %v44_v9  }
  0x49   :  { %1573 = vset.pattern.permute.xlu1 %v1594_v0 }
  0x4a   :  { %344 = vperm.xlu1 %1573, %v38_v26  }
  0x4b   :  { %166 = vperm.xlu0 %1587, %v47_v27  }
  0x4e   :  { %348 = vperm.xlu1 %1573, %v39_v23  }
  0x4f   :  { %171 = vperm.xlu0 %1587, %v48_v11  }
  0x52   :  { %1574 = vset.pattern.permute.xlu1 %v1595_v7 }
  0x53   :  { %186 = vperm.xlu0 %1587, %v51_v28   ;;  %136 = vperm.xlu1 %1574, %v41_v29  }
  0x57   :  { %191 = vperm.xlu0 %1587, %v52_v12   ;;  %1575 = vset.pattern.permute.xlu1 %v1594_v0 }
  0x58   :  { %356 = vperm.xlu1 %1575, %v41_v29  }
  0x5b   :  { %206 = vperm.xlu0 %1587, %v1734_v30  }
  0x5c   :  { %1576 = vset.pattern.permute.xlu1 %v1595_v7 }
  0x5d   :  { %141 = vperm.xlu1 %1576, %v42_v31  }
  0x5f   :  { %211 = vperm.xlu0 %1587, %v56_v32  }
  0x61   :  { %1577 = vset.pattern.permute.xlu1 %v1594_v0 }
  0x62   :  { %360 = vperm.xlu1 %1577, %v42_v31  }
  0x63   :  { %1592 = vset.pattern.permute.xlu0 %v1594_v0 }
  0x64   :  { %416 = vperm.xlu0 %1592, %v56_v32  }
  0x66   :  { %364 = vperm.xlu1 %1577, %v43_v25  }
  0x6a   :  { %1578 = vset.pattern.permute.xlu1 %v1595_v7 }
  0x6b   :  { %156 = vperm.xlu1 %1578, %v45_v33  }
  0x6f   :  { %1579 = vset.pattern.permute.xlu1 %v1594_v0 }
  0x70   :  { %372 = vperm.xlu1 %1579, %v45_v33  }
  0x74   :  { %1580 = vset.pattern.permute.xlu1 %v1595_v7 }
  0x75   :  { %161 = vperm.xlu1 %1580, %v46_v34  }
  0x79   :  { %1581 = vset.pattern.permute.xlu1 %v1594_v0 }
  0x7a   :  { %376 = vperm.xlu1 %1581, %v46_v34  }
  0x7e   :  { %380 = vperm.xlu1 %1581, %v47_v27  }
  0x81   :  { %v297_v36 = vpop.permute.xlu1 %296  ;;  %v305_v37 = vpop.permute.xlu0 %304 }
  0x82   :  { %1582 = vset.pattern.permute.xlu1 %v1595_v7  ;;  %v427_v57 = vmul.f32 %v1785_v52, %v297_v36  ;;  %v429_v9 = vmul.f32 %v1785_v52, %v305_v37 }
  0x83   :  { %176 = vperm.xlu1 %1582, %v49_v35  }
  0x85   :  { %v301_v38 = vpop.permute.xlu1 %300  ;;  %v1760_v39 = vpop.permute.xlu0 %320 }
  0x86   :  { %v428_v2 = vmul.f32 %v1785_v52, %v301_v38  ;;  %v433_v33 = vmul.f32 %v1785_v52, %v1760_v39  ;;  %v57_v38 = vld [vmem:[%s2189_s0 + $0xf8] sm:$0xff] }
  0x87   :  { %1583 = vset.pattern.permute.xlu1 %v1594_v0 }
  0x88   :  { %388 = vperm.xlu1 %1583, %v49_v35  }
  0x89   :  { %v1763_v40 = vpop.permute.xlu0 %336 }
  0x8a   :  { %v77_v41 = vpop.permute.xlu1 %76 }
  0x8b   :  { %v226_v1 = vmul.f32 %v1790_v53, %v77_v41 }
  0x8c   :  { %1584 = vset.pattern.permute.xlu1 %v1595_v7 }
  0x8d   :  { %181 = vperm.xlu1 %1584, %v50_v42   ;;  %v1769_v43 = vpop.permute.xlu0 %352  ;;  %v265_v14 = vadd.f32 %v1797_v56, %v226_v1 }
  0x8f   :  { %v309_v44 = vpop.permute.xlu1 %308 }
  0x90   :  { %v430_v6 = vmul.f32 %v1785_v52, %v309_v44 }
  0x91   :  { %1585 = vset.pattern.permute.xlu1 %v1594_v0  ;;  %v1772_v45 = vpop.permute.xlu0 %368 }
  0x92   :  { %392 = vperm.xlu1 %1585, %v50_v42   ;;  %v462_v18 = vadd.f32 %v430_v6, %v265_v14 }
  0x94   :  { %v82_v46 = vpop.permute.xlu1 %81 }
  0x95   :  { %v1774_v47 = vpop.permute.xlu0 %384  ;;  %v227_v3 = vmul.f32 %v1790_v53, %v82_v46 }
  0x96   :  { %396 = vperm.xlu1 %1585, %v51_v28   ;;  %v494_v28 = vmax.f32 %v462_v18, 0.0 }
  0x97   :  { %v266_v15 = vadd.f32 %v1797_v56, %v227_v3 }
  0x99   :  { %v313_v49 = vpop.permute.xlu1 %312  ;;  %v1779_v50 = vpop.permute.xlu0 %400 }
  0x9a   :  { %1586 = vset.pattern.permute.xlu1 %v1595_v7  ;;  %v431_v10 = vmul.f32 %v1785_v52, %v313_v49 }
  0x9b   :  { %196 = vperm.xlu1 %1586, %v53_v48  }
  0x9c   :  { %v463_v20 = vadd.f32 %v431_v10, %v266_v15  ;;  %v889_v10 = vld [vmem:[%s2193_s5 + $0x8] sm:$0xff] }
  0x9d   :  { %v317_v51 = vpop.permute.xlu1 %316 }
  0x9e   :  { %v62_v54 = vpop.permute.xlu0 %61  ;;  %v432_v25 = vmul.f32 %v1785_v52, %v317_v51  ;;  %v495_v34 = vmax.f32 %v463_v20, 0.0 }
  0x9f   :  { %v223_v55 = vmul.f32 %v1790_v53, %v62_v54  ;;  %1588 = vset.pattern.permute.xlu1 %v1594_v0 }
  0xa0   :  { %404 = vperm.xlu1 %1588, %v53_v48  }
  0xa1   :  { %v262_v58 = vadd.f32 %v1797_v56, %v223_v55 }
  0xa2   :  { %v67_v59 = vpop.permute.xlu0 %66  ;;  %v97_v60 = vpop.permute.xlu1 %96 }
  0xa3   :  { %v224_v62 = vmul.f32 %v1790_v53, %v67_v59  ;;  %v459_v63 = vadd.f32 %v427_v57, %v262_v58  ;;  %v230_v23 = vmul.f32 %v1790_v53, %v97_v60 }
  0xa4   :  { %1589 = vset.pattern.permute.xlu1 %v1595_v7 }
  0xa5   :  { %v263_v4 = vadd.f32 %v1797_v56, %v224_v62  ;;  %201 = vperm.xlu1 %1589, %v54_v61   ;;  %v491_v5 = vmax.f32 %v459_v63, 0.0  ;;  %v269_v37 = vadd.f32 %v1797_v56, %v230_v23  ;;  %v437_v63 = vmul.f32 %v1785_v52, %v1763_v40 }
  0xa6   :  { %v72_v8 = vpop.permute.xlu0 %71 }
  0xa7   :  { %v460_v11 = vadd.f32 %v428_v2, %v263_v4  ;;  %v225_v12 = vmul.f32 %v1790_v53, %v72_v8  ;;  %1438 = vmatprep.mubr.msk.f32.mxu0 %vm534_vm0, %v491_v5  ;;  %v325_v13 = vpop.permute.xlu1 %324 }
  0xa8   :  { %v434_v29 = vmul.f32 %v1785_v52, %v325_v13 }
  0xa9   :  { %v492_v16 = vmax.f32 %v460_v11, 0.0  ;;  %v264_v17 = vadd.f32 %v1797_v56, %v225_v12  ;;  %1590 = vset.pattern.permute.xlu1 %v1594_v0 }
  0xaa   :  { %v87_v19 = vpop.permute.xlu0 %86  ;;  %408 = vperm.xlu1 %1590, %v54_v61   ;;  %v466_v42 = vadd.f32 %v434_v29, %v269_v37 }
  0xab   :  { %v461_v21 = vadd.f32 %v429_v9, %v264_v17  ;;  %v228_v22 = vmul.f32 %v1790_v53, %v87_v19  ;;  %1439 = vmatmul.mubr.msk.f32.vlgmr.msra.gmra.mrb[0].mxu0 %vm534_vm0, %v492_v16  ;;  %v888_v9 = vld [vmem:[%s2193_s5] sm:$0xff] }
  0xac   :  { %v102_v24 = vpop.permute.xlu1 %101  ;;  %v498_v59 = vmax.f32 %v466_v42, 0.0  ;;  %v1550_v13 = vpack.c.bf16 %v889_v10, %v888_v9 }
  0xad   :  { %v493_v26 = vmax.f32 %v461_v21, 0.0  ;;  %v267_v27 = vadd.f32 %v1797_v56, %v228_v22  ;;  %v231_v31 = vmul.f32 %v1790_v53, %v102_v24  ;;  %v441_v21 = vmul.f32 %v1785_v52, %v1769_v43 }
  0xae   :  { %v92_v32 = vpop.permute.xlu0 %91  ;;  %412 = vperm.xlu1 %1590, %v1734_v30   ;;  %1551 = vmatprep.subr.bf16.mxu1 %v1550_v13 }
  0xaf   :  { %v464_v35 = vadd.f32 %v432_v25, %v267_v27  ;;  %v229_v36 = vmul.f32 %v1790_v53, %v92_v32  ;;  %1441 = vmatprep.mubr.msk.f32.mxu0 %vm534_vm0, %v493_v26  ;;  %v270_v44 = vadd.f32 %v1797_v56, %v231_v31  ;;  %1553 = vmatpush3.bf16.msra.mxu1 %v1550_v13 }
  0xb0   :  { %1442 = vmatmul.mubr.msk.f32.gmra.mrb[2].mxu0 %vm534_vm0, %v494_v28 }
  0xb1   :  { %v496_v41 = vmax.f32 %v464_v35, 0.0  ;;  %v268_v30 = vadd.f32 %v1797_v56, %v229_v36  ;;  %1444 = vmatprep.mubr.msk.f32.mxu0 %vm534_vm0, %v495_v34  ;;  %v329_v39 = vpop.permute.xlu1 %328 }
  0xb2   :  { %v435_v46 = vmul.f32 %v1785_v52, %v329_v39  ;;  %v107_v48 = vpop.permute.xlu0 %106  ;;  %1591 = vset.pattern.permute.xlu1 %v1595_v7 }
  0xb3   :  { %v465_v49 = vadd.f32 %v433_v33, %v268_v30  ;;  %v232_v51 = vmul.f32 %v1790_v53, %v107_v48  ;;  %216 = vperm.xlu1 %1591, %v57_v38  }
  0xb4   :  { %v467_v54 = vadd.f32 %v435_v46, %v270_v44  ;;  %1445 = vmatmul.mubr.msk.f32.gmra.mrb[4].mxu0 %vm534_vm0, %v496_v41 }
  0xb5   :  { %v497_v55 = vmax.f32 %v465_v49, 0.0  ;;  %v271_v57 = vadd.f32 %v1797_v56, %v232_v51  ;;  %v333_v58 = vpop.permute.xlu1 %332 }
  0xb6   :  { %v499_v60 = vmax.f32 %v467_v54, 0.0  ;;  %v436_v61 = vmul.f32 %v1785_v52, %v333_v58  ;;  %v112_v62 = vpop.permute.xlu0 %111  ;;  %v445_v58 = vmul.f32 %v1785_v52, %v1772_v45 }
  0xb7   :  { %v233_v7 = vmul.f32 %v1790_v53, %v112_v62  ;;  %1593 = vset.pattern.permute.xlu1 %v1594_v0  ;;  %1447 = vmatprep.mubr.msk.f32.mxu0 %vm534_vm0, %v497_v55 }
  0xb8   :  { %v468_v1 = vadd.f32 %v436_v61, %v271_v57  ;;  %420 = vperm.xlu1 %1593, %v57_v38   ;;  %1448 = vmatmul.mubr.msk.f32.gmra.mrb[6].mxu0 %vm534_vm0, %v498_v59 }
  0xb9   :  { %v272_v2 = vadd.f32 %v1797_v56, %v233_v7  ;;  %1450 = vmatprep.mubr.msk.f32.mxu0 %vm534_vm0, %v499_v60 }
  0xba   :  { %v500_v3 = vmax.f32 %v468_v1, 0.0  ;;  %v117_v4 = vpop.permute.xlu1 %116  ;;  %v127_v8 = vpop.permute.xlu0 %126 }
  0xbb   :  { %v469_v5 = vadd.f32 %v437_v63, %v272_v2  ;;  %v234_v6 = vmul.f32 %v1790_v53, %v117_v4  ;;  %v236_v20 = vmul.f32 %v1790_v53, %v127_v8 }
  0xbc   :  { %1451 = vmatmul.mubr.msk.f32.gmra.mrb[8].mxu0 %vm534_vm0, %v500_v3 }
  0xbd   :  { %v501_v40 = vmax.f32 %v469_v5, 0.0  ;;  %v273_v11 = vadd.f32 %v1797_v56, %v234_v6  ;;  %v275_v26 = vadd.f32 %v1797_v56, %v236_v20 }
  0xbe   :  { %v132_v15 = vpop.permute.xlu0 %131 }
  0xbf   :  { %v341_v0 = vpop.permute.xlu1 %340  ;;  %1453 = vmatprep.mubr.msk.f32.mxu0 %vm534_vm0, %v501_v40  ;;  %v237_v18 = vmul.f32 %v1790_v53, %v132_v15 }
  0xc0   :  { %v438_v12 = vmul.f32 %v1785_v52, %v341_v0 }
  0xc1   :  { %v276_v22 = vadd.f32 %v1797_v56, %v237_v18 }
  0xc2   :  { %v470_v14 = vadd.f32 %v438_v12, %v273_v11  ;;  %v147_v38 = vpop.permute.xlu0 %146 }
  0xc3   :  { %v473_v28 = vadd.f32 %v441_v21, %v276_v22  ;;  %v240_v51 = vmul.f32 %v1790_v53, %v147_v38 }
  0xc4   :  { %v502_v16 = vmax.f32 %v470_v14, 0.0  ;;  %v122_v17 = vpop.permute.xlu1 %121 }
  0xc5   :  { %v235_v19 = vmul.f32 %v1790_v53, %v122_v17  ;;  %v505_v34 = vmax.f32 %v473_v28, 0.0  ;;  %v279_v60 = vadd.f32 %v1797_v56, %v240_v51 }
  0xc6   :  { %1454 = vmatmul.mubr.msk.f32.gmra.mrb[10].mxu0 %vm534_vm0, %v502_v16  ;;  %v152_v46 = vpop.permute.xlu0 %151 }
  0xc7   :  { %v274_v24 = vadd.f32 %v1797_v56, %v235_v19  ;;  %v241_v49 = vmul.f32 %v1790_v53, %v152_v46  ;;  %v449_v19 = vmul.f32 %v1785_v52, %v1774_v47 }
  0xc9   :  { %v345_v23 = vpop.permute.xlu1 %344  ;;  %v280_v59 = vadd.f32 %v1797_v56, %v241_v49 }
  0xca   :  { %v439_v25 = vmul.f32 %v1785_v52, %v345_v23  ;;  %v167_v40 = vpop.permute.xlu0 %166 }
  0xcb   :  { %v477_v1 = vadd.f32 %v445_v58, %v280_v59  ;;  %v244_v16 = vmul.f32 %v1790_v53, %v167_v40 }
  0xcc   :  { %v471_v27 = vadd.f32 %v439_v25, %v274_v24 }
  0xcd   :  { %v349_v29 = vpop.permute.xlu1 %348  ;;  %v509_v5 = vmax.f32 %v477_v1, 0.0  ;;  %v283_v23 = vadd.f32 %v1797_v56, %v244_v16 }
  0xce   :  { %v503_v31 = vmax.f32 %v471_v27, 0.0  ;;  %v440_v32 = vmul.f32 %v1785_v52, %v349_v29  ;;  %v172_v12 = vpop.permute.xlu0 %171  ;;  %v891_v27 = vld [vmem:[%s2193_s5 + $0x18] sm:$0xff] }
  0xcf   :  { %v245_v14 = vmul.f32 %v1790_v53, %v172_v12 }
  0xd0   :  { %v472_v33 = vadd.f32 %v440_v32, %v275_v26  ;;  %1456 = vmatprep.mubr.msk.f32.mxu0 %vm534_vm0, %v503_v31  ;;  %v890_v26 = vld [vmem:[%s2193_s5 + $0x10] sm:$0xff] }
  0xd1   :  { %v284_v20 = vadd.f32 %v1797_v56, %v245_v14  ;;  %v1554_v29 = vpack.c.bf16 %v891_v27, %v890_v26 }
  0xd2   :  { %v504_v43 = vmax.f32 %v472_v33, 0.0  ;;  %v137_v35 = vpop.permute.xlu1 %136 }
  0xd3   :  { %v238_v36 = vmul.f32 %v1790_v53, %v137_v35  ;;  %v481_v28 = vadd.f32 %v449_v19, %v284_v20  ;;  %1555 = vmatprep.subr.bf16.mxu1 %v1554_v29 }
  0xd4   :  { %1457 = vmatmul.mubr.msk.f32.gmra.mrb[12].mxu0 %vm534_vm0, %v504_v43  ;;  %1557 = vmatpush3.bf16.msra.mxu1 %v1554_v29  ;;  %v187_v43 = vpop.permute.xlu0 %186 }
  0xd5   :  { %1459 = vmatprep.mubr.msk.f32.mxu0 %vm534_vm0, %v505_v34  ;;  %v277_v41 = vadd.f32 %v1797_v56, %v238_v36  ;;  %v513_v33 = vmax.f32 %v481_v28, 0.0 }
  0xd7   :  { %v357_v37 = vpop.permute.xlu1 %356 }
  0xd8   :  { %v442_v30 = vmul.f32 %v1785_v52, %v357_v37 }
  0xda   :  { %v474_v39 = vadd.f32 %v442_v30, %v277_v41  ;;  %v192_v41 = vpop.permute.xlu0 %191 }
  0xdc   :  { %v506_v42 = vmax.f32 %v474_v39, 0.0  ;;  %v142_v44 = vpop.permute.xlu1 %141 }
  0xdd   :  { %v239_v48 = vmul.f32 %v1790_v53, %v142_v44  ;;  %v249_v44 = vmul.f32 %v1790_v53, %v192_v41 }
  0xde   :  { %1460 = vmatmul.mubr.msk.f32.gmra.mrb[14].mxu0 %vm534_vm0, %v506_v42 }
  0xdf   :  { %v278_v55 = vadd.f32 %v1797_v56, %v239_v48  ;;  %v248_v48 = vmul.f32 %v1790_v53, %v187_v43 }
  0xe1   :  { %v361_v54 = vpop.permute.xlu1 %360  ;;  %v287_v59 = vadd.f32 %v1797_v56, %v248_v48 }
  0xe2   :  { %v443_v57 = vmul.f32 %v1785_v52, %v361_v54  ;;  %v288_v54 = vadd.f32 %v1797_v56, %v249_v44 }
  0xe4   :  { %v475_v61 = vadd.f32 %v443_v57, %v278_v55  ;;  %v453_v57 = vmul.f32 %v1785_v52, %v1779_v50 }
  0xe5   :  { %v365_v62 = vpop.permute.xlu1 %364 }
  0xe6   :  { %v507_v63 = vmax.f32 %v475_v61, 0.0  ;;  %v444_v7 = vmul.f32 %v1785_v52, %v365_v62  ;;  %v485_v62 = vadd.f32 %v453_v57, %v288_v54 }
  0xe8   :  { %v476_v2 = vadd.f32 %v444_v7, %v279_v60  ;;  %1462 = vmatprep.mubr.msk.f32.mxu0 %vm534_vm0, %v507_v63 }
  0xea   :  { %v508_v3 = vmax.f32 %v476_v2, 0.0  ;;  %v157_v4 = vpop.permute.xlu1 %156  ;;  %v517_v2 = vmax.f32 %v485_v62, 0.0 }
  0xeb   :  { %v242_v6 = vmul.f32 %v1790_v53, %v157_v4 }
  0xec   :  { %1463 = vmatmul.mubr.msk.f32.gmra.mrb[16].mxu0 %vm534_vm0, %v508_v3  ;;  %v207_v3 = vpop.permute.xlu0 %206 }
  0xed   :  { %1465 = vmatprep.mubr.msk.f32.mxu0 %vm534_vm0, %v509_v5  ;;  %v281_v8 = vadd.f32 %v1797_v56, %v242_v6 }
  0xef   :  { %v373_v45 = vpop.permute.xlu1 %372 }
  0xf0   :  { %v446_v0 = vmul.f32 %v1785_v52, %v373_v45  ;;  %v212_v45 = vpop.permute.xlu0 %211 }
  0xf2   :  { %v478_v9 = vadd.f32 %v446_v0, %v281_v8 }
  0xf4   :  { %v510_v10 = vmax.f32 %v478_v9, 0.0  ;;  %v162_v11 = vpop.permute.xlu1 %161 }
  0xf5   :  { %v243_v13 = vmul.f32 %v1790_v53, %v162_v11  ;;  %v417_v11 = vpop.permute.xlu0 %416 }
  0xf6   :  { %1466 = vmatmul.mubr.msk.f32.gmra.mrb[18].mxu0 %vm534_vm0, %v510_v10  ;;  %v253_v10 = vmul.f32 %v1790_v53, %v212_v45 }
  0xf7   :  { %v282_v17 = vadd.f32 %v1797_v56, %v243_v13  ;;  %v252_v13 = vmul.f32 %v1790_v53, %v207_v3 }
  0xf8   :  { %v292_v16 = vadd.f32 %v1797_v56, %v253_v10 }
  0xf9   :  { %v377_v15 = vpop.permute.xlu1 %376  ;;  %v291_v20 = vadd.f32 %v1797_v56, %v252_v13 }
  0xfa   :  { %v447_v18 = vmul.f32 %v1785_v52, %v377_v15 }
  0xfc   :  { %v479_v21 = vadd.f32 %v447_v18, %v282_v17  ;;  %v457_v17 = vmul.f32 %v1785_v52, %v417_v11 }
  0xfd   :  { %v381_v22 = vpop.permute.xlu1 %380 }
  0xfe   :  { %v511_v24 = vmax.f32 %v479_v21, 0.0  ;;  %v448_v25 = vmul.f32 %v1785_v52, %v381_v22 }
 0x100   :  { %v480_v47 = vadd.f32 %v448_v25, %v283_v23  ;;  %1468 = vmatprep.mubr.msk.f32.mxu0 %vm534_vm0, %v511_v24  ;;  %v489_v23 = vadd.f32 %v457_v17, %v292_v16 }
 0x102   :  { %v512_v31 = vmax.f32 %v480_v47, 0.0  ;;  %v177_v32 = vpop.permute.xlu1 %176  ;;  %v521_v27 = vmax.f32 %v489_v23, 0.0 }
 0x103   :  { %v246_v34 = vmul.f32 %v1790_v53, %v177_v32 }
 0x104   :  { %1469 = vmatmul.mubr.msk.f32.gmra.mrb[20].mxu0 %vm534_vm0, %v512_v31 }
 0x105   :  { %1471 = vmatprep.mubr.msk.f32.mxu0 %vm534_vm0, %v513_v33  ;;  %v285_v36 = vadd.f32 %v1797_v56, %v246_v34  ;;  %v1958_v34 = vld [vmem:[%s2194_s4] ss:$0 sm:$0xff] }
 0x107   :  { %v389_v35 = vpop.permute.xlu1 %388 }
 0x108   :  { %v450_v37 = vmul.f32 %v1785_v52, %v389_v35 }
 0x10a   :  { %v482_v38 = vadd.f32 %v450_v37, %v285_v36 }
 0x10c   :  { %v514_v30 = vmax.f32 %v482_v38, 0.0  ;;  %v182_v39 = vpop.permute.xlu1 %181 }
 0x10d   :  { %v247_v42 = vmul.f32 %v1790_v53, %v182_v39 }
 0x10e   :  { %1472 = vmatmul.mubr.msk.f32.gmra.mrb[22].mxu0 %vm534_vm0, %v514_v30 }
 0x10f   :  { %v286_v49 = vadd.f32 %v1797_v56, %v247_v42 }
 0x111   :  { %v393_v46 = vpop.permute.xlu1 %392 }
 0x112   :  { %v451_v51 = vmul.f32 %v1785_v52, %v393_v46 }
 0x114   :  { %v483_v55 = vadd.f32 %v451_v51, %v286_v49 }
 0x115   :  { %v397_v58 = vpop.permute.xlu1 %396 }
 0x116   :  { %v515_v60 = vmax.f32 %v483_v55, 0.0  ;;  %v452_v61 = vmul.f32 %v1785_v52, %v397_v58 }
 0x118   :  { %v484_v63 = vadd.f32 %v452_v61, %v287_v59  ;;  %1474 = vmatprep.mubr.msk.f32.mxu0 %vm534_vm0, %v515_v60 }
 0x11a   :  { %v516_v7 = vmax.f32 %v484_v63, 0.0  ;;  %v197_v1 = vpop.permute.xlu1 %196 }
 0x11b   :  { %v250_v4 = vmul.f32 %v1790_v53, %v197_v1 }
 0x11c   :  { %1475 = vmatmul.mubr.msk.f32.gmra.mrb[24].mxu0 %vm534_vm0, %v516_v7 }
 0x11d   :  { %1477 = vmatprep.mubr.msk.f32.mxu0 %vm534_vm0, %v517_v2  ;;  %v289_v5 = vadd.f32 %v1797_v56, %v250_v4 }
 0x11f   :  { %v405_v50 = vpop.permute.xlu1 %404 }
 0x120   :  { %v454_v6 = vmul.f32 %v1785_v52, %v405_v50 }
 0x122   :  { %v486_v40 = vadd.f32 %v454_v6, %v289_v5 }
 0x124   :  { %v518_v8 = vmax.f32 %v486_v40, 0.0  ;;  %v202_v0 = vpop.permute.xlu1 %201 }
 0x125   :  { %v251_v9 = vmul.f32 %v1790_v53, %v202_v0 }
 0x126   :  { %1478 = vmatmul.mubr.msk.f32.gmra.mrb[26].mxu0 %vm534_vm0, %v518_v8 }
 0x127   :  { %v290_v14 = vadd.f32 %v1797_v56, %v251_v9 }
 0x129   :  { %v409_v12 = vpop.permute.xlu1 %408 }
 0x12a   :  { %v455_v15 = vmul.f32 %v1785_v52, %v409_v12 }
 0x12c   :  { %v487_v18 = vadd.f32 %v455_v15, %v290_v14 }
 0x12d   :  { %v413_v19 = vpop.permute.xlu1 %412 }
 0x12e   :  { %v519_v21 = vmax.f32 %v487_v18, 0.0  ;;  %v456_v22 = vmul.f32 %v1785_v52, %v413_v19 }
 0x130   :  { %v488_v24 = vadd.f32 %v456_v22, %v291_v20  ;;  %1480 = vmatprep.mubr.msk.f32.mxu0 %vm534_vm0, %v519_v21 }
 0x132   :  { %v520_v25 = vmax.f32 %v488_v24, 0.0  ;;  %v217_v26 = vpop.permute.xlu1 %216 }
 0x133   :  { %v254_v28 = vmul.f32 %v1790_v53, %v217_v26 }
 0x134   :  { %1481 = vmatmul.mubr.msk.f32.gmra.mrb[28].mxu0 %vm534_vm0, %v520_v25 }
 0x135   :  { %1483 = vmatprep.mubr.msk.f32.mxu0 %vm534_vm0, %v521_v27  ;;  %v293_v47 = vadd.f32 %v1797_v56, %v254_v28 }
 0x137   :  { %v421_v29 = vpop.permute.xlu1 %420 }
 0x138   :  { %v458_v31 = vmul.f32 %v1785_v52, %v421_v29 }
 0x13a   :  { %v490_v32 = vadd.f32 %v458_v31, %v293_v47 }
 0x13c   :  { %v522_v33 = vmax.f32 %v490_v32, 0.0 }
 0x13e   :  { %1484 = vmatmul.mubr.msk.f32.gmra.mrb[30].mxu0 %vm534_vm0, %v522_v33 }
 0x17e   :  { %v1440_v43 = vpop.f32.mrb[0].mxu0 }
 0x17f   :  { %v703_v53 = vadd.f32 %v1440_v43, %v1958_v34  ;;  %v697_v35 = vpop.f32.mrb[1].mxu0 }
 0x180   :  { %v698_v36 = vadd.f32 %v1958_v34, %v697_v35 }
 0x181   :  { %v857_v38 = vmax.f32 %v703_v53, 0.0 }
 0x182   :  { %v856_v37 = vmax.f32 %v698_v36, 0.0 }
 0x183   :  { %v1443_v56 = vpop.f32.mrb[2].mxu0 }
 0x184   :  { %v713_v52 = vadd.f32 %v1443_v56, %v1958_v34  ;;  %v707_v41 = vpop.f32.mrb[3].mxu0  ;;  %1494 = vmatprep.mubr.msk.f32.mxu1 %vm534_vm0, %v856_v37 }
 0x185   :  { %v708_v30 = vadd.f32 %v1958_v34, %v707_v41  ;;  %1495 = vmatmul.mubr.msk.f32.vlgmr.msra.gmra.mrb[0].mxu1 %vm534_vm0, %v857_v38 }
 0x186   :  { %v859_v44 = vmax.f32 %v713_v52, 0.0 }
 0x187   :  { %v858_v39 = vmax.f32 %v708_v30, 0.0  ;;  %v1446_v42 = vpop.f32.mrb[4].mxu0 }
 0x188   :  { %v723_v46 = vadd.f32 %v1446_v42, %v1958_v34  ;;  %v717_v48 = vpop.f32.mrb[5].mxu0 }
 0x189   :  { %v718_v49 = vadd.f32 %v1958_v34, %v717_v48  ;;  %1497 = vmatprep.mubr.msk.f32.mxu1 %vm534_vm0, %v858_v39 }
 0x18a   :  { %1498 = vmatmul.mubr.msk.f32.gmra.mrb[2].mxu1 %vm534_vm0, %v859_v44  ;;  %v861_v55 = vmax.f32 %v723_v46, 0.0 }
 0x18b   :  { %v860_v51 = vmax.f32 %v718_v49, 0.0  ;;  %v1449_v54 = vpop.f32.mrb[6].mxu0 }
 0x18c   :  { %v733_v57 = vadd.f32 %v1449_v54, %v1958_v34  ;;  %v727_v58 = vpop.f32.mrb[7].mxu0 }
 0x18d   :  { %v728_v59 = vadd.f32 %v1958_v34, %v727_v58  ;;  %1500 = vmatprep.mubr.msk.f32.mxu1 %vm534_vm0, %v860_v51 }
 0x18e   :  { %1501 = vmatmul.mubr.msk.f32.gmra.mrb[4].mxu1 %vm534_vm0, %v861_v55  ;;  %v863_v62 = vmax.f32 %v733_v57, 0.0 }
 0x18f   :  { %v862_v60 = vmax.f32 %v728_v59, 0.0  ;;  %v1452_v61 = vpop.f32.mrb[8].mxu0 }
 0x190   :  { %v743_v63 = vadd.f32 %v1452_v61, %v1958_v34  ;;  %v737_v7 = vpop.f32.mrb[9].mxu0 }
 0x191   :  { %v738_v1 = vadd.f32 %v1958_v34, %v737_v7  ;;  %1503 = vmatprep.mubr.msk.f32.mxu1 %vm534_vm0, %v862_v60 }
 0x192   :  { %1504 = vmatmul.mubr.msk.f32.gmra.mrb[6].mxu1 %vm534_vm0, %v863_v62  ;;  %v865_v3 = vmax.f32 %v743_v63, 0.0 }
 0x193   :  { %v864_v2 = vmax.f32 %v738_v1, 0.0 }
 0x195   :  { %1506 = vmatprep.mubr.msk.f32.mxu1 %vm534_vm0, %v864_v2 }
 0x196   :  { %1507 = vmatmul.mubr.msk.f32.gmra.mrb[8].mxu1 %vm534_vm0, %v865_v3 }
 0x199   :  { %v1455_v4 = vpop.f32.mrb[10].mxu0 }
 0x19a   :  { %v753_v50 = vadd.f32 %v1455_v4, %v1958_v34  ;;  %v747_v5 = vpop.f32.mrb[11].mxu0 }
 0x19b   :  { %v748_v6 = vadd.f32 %v1958_v34, %v747_v5 }
 0x19c   :  { %v867_v40 = vmax.f32 %v753_v50, 0.0 }
 0x19d   :  { %v866_v45 = vmax.f32 %v748_v6, 0.0  ;;  %v2027_v6 = vld [vmem:[%s2195_s6] ss:$0 sm:$0xff] }
 0x19f   :  { %1509 = vmatprep.mubr.msk.f32.mxu1 %vm534_vm0, %v866_v45 }
 0x1a0   :  { %1510 = vmatmul.mubr.msk.f32.gmra.mrb[10].mxu1 %vm534_vm0, %v867_v40 }
 0x1a7   :  { %v1458_v8 = vpop.f32.mrb[12].mxu0 }
 0x1a8   :  { %v763_v0 = vadd.f32 %v1458_v8, %v1958_v34  ;;  %v757_v9 = vpop.f32.mrb[13].mxu0 }
 0x1a9   :  { %v758_v10 = vadd.f32 %v1958_v34, %v757_v9 }
 0x1aa   :  { %v869_v12 = vmax.f32 %v763_v0, 0.0 }
 0x1ab   :  { %v868_v11 = vmax.f32 %v758_v10, 0.0 }
 0x1ad   :  { %1512 = vmatprep.mubr.msk.f32.mxu1 %vm534_vm0, %v868_v11 }
 0x1ae   :  { %1513 = vmatmul.mubr.msk.f32.gmra.mrb[12].mxu1 %vm534_vm0, %v869_v12 }
 0x1b1   :  { %v1461_v13 = vpop.f32.mrb[14].mxu0 }
 0x1b2   :  { %v773_v14 = vadd.f32 %v1461_v13, %v1958_v34  ;;  %v767_v15 = vpop.f32.mrb[15].mxu0 }
 0x1b3   :  { %v768_v16 = vadd.f32 %v1958_v34, %v767_v15 }
 0x1b4   :  { %v871_v18 = vmax.f32 %v773_v14, 0.0 }
 0x1b5   :  { %v870_v17 = vmax.f32 %v768_v16, 0.0 }
 0x1b7   :  { %1515 = vmatprep.mubr.msk.f32.mxu1 %vm534_vm0, %v870_v17 }
 0x1b8   :  { %1516 = vmatmul.mubr.msk.f32.gmra.mrb[14].mxu1 %vm534_vm0, %v871_v18 }
 0x1bf   :  { %v1464_v19 = vpop.f32.mrb[16].mxu0 }
 0x1c0   :  { %v783_v20 = vadd.f32 %v1464_v19, %v1958_v34  ;;  %v777_v21 = vpop.f32.mrb[17].mxu0 }
 0x1c1   :  { %v778_v22 = vadd.f32 %v1958_v34, %v777_v21 }
 0x1c2   :  { %v873_v24 = vmax.f32 %v783_v20, 0.0 }
 0x1c3   :  { %v872_v23 = vmax.f32 %v778_v22, 0.0 }
 0x1c5   :  { %1518 = vmatprep.mubr.msk.f32.mxu1 %vm534_vm0, %v872_v23 }
 0x1c6   :  { %1519 = vmatmul.mubr.msk.f32.gmra.mrb[16].mxu1 %vm534_vm0, %v873_v24 }
 0x1c9   :  { %v1467_v25 = vpop.f32.mrb[18].mxu0 }
 0x1ca   :  { %v793_v26 = vadd.f32 %v1467_v25, %v1958_v34  ;;  %v787_v27 = vpop.f32.mrb[19].mxu0 }
 0x1cb   :  { %v788_v28 = vadd.f32 %v1958_v34, %v787_v27 }
 0x1cc   :  { %v875_v47 = vmax.f32 %v793_v26, 0.0 }
 0x1cd   :  { %v874_v29 = vmax.f32 %v788_v28, 0.0 }
 0x1cf   :  { %1521 = vmatprep.mubr.msk.f32.mxu1 %vm534_vm0, %v874_v29 }
 0x1d0   :  { %1522 = vmatmul.mubr.msk.f32.gmra.mrb[18].mxu1 %vm534_vm0, %v875_v47 }
 0x1d7   :  { %v1470_v31 = vpop.f32.mrb[20].mxu0 }
 0x1d8   :  { %v803_v32 = vadd.f32 %v1470_v31, %v1958_v34  ;;  %v797_v33 = vpop.f32.mrb[21].mxu0 }
 0x1d9   :  { %v798_v43 = vadd.f32 %v1958_v34, %v797_v33 }
 0x1da   :  { %v877_v35 = vmax.f32 %v803_v32, 0.0 }
 0x1db   :  { %v876_v53 = vmax.f32 %v798_v43, 0.0 }
 0x1dd   :  { %1524 = vmatprep.mubr.msk.f32.mxu1 %vm534_vm0, %v876_v53 }
 0x1de   :  { %1525 = vmatmul.mubr.msk.f32.gmra.mrb[20].mxu1 %vm534_vm0, %v877_v35 }
 0x1e1   :  { %v1473_v36 = vpop.f32.mrb[22].mxu0 }
 0x1e2   :  { %v813_v37 = vadd.f32 %v1473_v36, %v1958_v34  ;;  %v807_v38 = vpop.f32.mrb[23].mxu0 }
 0x1e3   :  { %v808_v56 = vadd.f32 %v1958_v34, %v807_v38 }
 0x1e4   :  { %v879_v41 = vmax.f32 %v813_v37, 0.0 }
 0x1e5   :  { %v878_v52 = vmax.f32 %v808_v56, 0.0 }
 0x1e7   :  { %1527 = vmatprep.mubr.msk.f32.mxu1 %vm534_vm0, %v878_v52 }
 0x1e8   :  { %1528 = vmatmul.mubr.msk.f32.gmra.mrb[22].mxu1 %vm534_vm0, %v879_v41 }
 0x1ef   :  { %v1476_v30 = vpop.f32.mrb[24].mxu0 }
 0x1f0   :  { %v823_v39 = vadd.f32 %v1476_v30, %v1958_v34  ;;  %v817_v42 = vpop.f32.mrb[25].mxu0 }
 0x1f1   :  { %v818_v44 = vadd.f32 %v1958_v34, %v817_v42 }
 0x1f2   :  { %v881_v48 = vmax.f32 %v823_v39, 0.0 }
 0x1f3   :  { %v880_v46 = vmax.f32 %v818_v44, 0.0 }
 0x1f5   :  { %1530 = vmatprep.mubr.msk.f32.mxu1 %vm534_vm0, %v880_v46 }
 0x1f6   :  { %1531 = vmatmul.mubr.msk.f32.gmra.mrb[24].mxu1 %vm534_vm0, %v881_v48 }
 0x1f9   :  { %v1479_v49 = vpop.f32.mrb[26].mxu0 }
 0x1fa   :  { %v833_v51 = vadd.f32 %v1479_v49, %v1958_v34  ;;  %v827_v54 = vpop.f32.mrb[27].mxu0 }
 0x1fb   :  { %v828_v55 = vadd.f32 %v1958_v34, %v827_v54 }
 0x1fc   :  { %v883_v58 = vmax.f32 %v833_v51, 0.0 }
 0x1fd   :  { %v882_v57 = vmax.f32 %v828_v55, 0.0 }
 0x1ff   :  { %1533 = vmatprep.mubr.msk.f32.mxu1 %vm534_vm0, %v882_v57 }
 0x200   :  { %1534 = vmatmul.mubr.msk.f32.gmra.mrb[26].mxu1 %vm534_vm0, %v883_v58 }
 0x207   :  { %v1482_v59 = vpop.f32.mrb[28].mxu0 }
 0x208   :  { %v843_v60 = vadd.f32 %v1482_v59, %v1958_v34  ;;  %v837_v61 = vpop.f32.mrb[29].mxu0 }
 0x209   :  { %v838_v62 = vadd.f32 %v1958_v34, %v837_v61 }
 0x20a   :  { %v885_v7 = vmax.f32 %v843_v60, 0.0 }
 0x20b   :  { %v884_v63 = vmax.f32 %v838_v62, 0.0 }
 0x20d   :  { %1536 = vmatprep.mubr.msk.f32.mxu1 %vm534_vm0, %v884_v63 }
 0x20e   :  { %1537 = vmatmul.mubr.msk.f32.gmra.mrb[28].mxu1 %vm534_vm0, %v885_v7 }
 0x211   :  { %v1485_v1 = vpop.f32.mrb[30].mxu0 }
 0x212   :  { %v853_v2 = vadd.f32 %v1485_v1, %v1958_v34  ;;  %v847_v3 = vpop.f32.mrb[31].mxu0 }
 0x213   :  { %v848_v4 = vadd.f32 %v1958_v34, %v847_v3 }
 0x214   :  { %v887_v5 = vmax.f32 %v853_v2, 0.0 }
 0x215   :  { %v886_v50 = vmax.f32 %v848_v4, 0.0 }
 0x217   :  { %1539 = vmatprep.mubr.msk.f32.mxu1 %vm534_vm0, %v886_v50 }
 0x218   :  { %1540 = vmatmul.mubr.msk.f32.gmra.mrb[30].mxu1 %vm534_vm0, %v887_v5 }
 0x258   :  { %v1496_v45 = vpop.f32.mrb[0].mxu1 }
 0x259   :  { %v1067_v40 = vadd.f32 %v1496_v45, %v2027_v6  ;;  %v1061_v8 = vpop.f32.mrb[1].mxu1 }
 0x25a   :  { %v1062_v0 = vadd.f32 %v2027_v6, %v1061_v8 }
 0x25b   :  { %v1221_v9 = vmax.f32 %v1067_v40, 0.0 }
 0x25c   :  { %v1220_v34 = vmax.f32 %v1062_v0, 0.0 }
 0x25d   :  { %1254 = vst.msk [vmem:[%s2196_s7 + $0x8] sm:$0xff] %vm1252_vm1, %v1221_v9  ;;  %v1499_v10 = vpop.f32.mrb[2].mxu1 }
 0x25e   :  { %1253 = vst.msk [vmem:[%s2196_s7] sm:$0xff] %vm1252_vm1, %v1220_v34  ;;  %v1077_v11 = vadd.f32 %v1499_v10, %v2027_v6  ;;  %v1071_v12 = vpop.f32.mrb[3].mxu1 }
 0x25f   :  { %v1072_v13 = vadd.f32 %v2027_v6, %v1071_v12 }
 0x260   :  { %v1223_v14 = vmax.f32 %v1077_v11, 0.0 }
 0x261   :  { %v1222_v15 = vmax.f32 %v1072_v13, 0.0  ;;  %v1502_v16 = vpop.f32.mrb[4].mxu1 }
 0x262   :  { %1256 = vst.msk [vmem:[%s2196_s7 + $0x18] sm:$0xff] %vm1252_vm1, %v1223_v14  ;;  %v1087_v17 = vadd.f32 %v1502_v16, %v2027_v6  ;;  %v1081_v18 = vpop.f32.mrb[5].mxu1 }
 0x263   :  { %1255 = vst.msk [vmem:[%s2196_s7 + $0x10] sm:$0xff] %vm1252_vm1, %v1222_v15  ;;  %v1082_v19 = vadd.f32 %v2027_v6, %v1081_v18 }
 0x264   :  { %v1225_v20 = vmax.f32 %v1087_v17, 0.0 }
 0x265   :  { %v1224_v21 = vmax.f32 %v1082_v19, 0.0  ;;  %v1505_v22 = vpop.f32.mrb[6].mxu1 }
 0x266   :  { %1258 = vst.msk [vmem:[%s2196_s7 + $0x28] sm:$0xff] %vm1252_vm1, %v1225_v20  ;;  %v1097_v23 = vadd.f32 %v1505_v22, %v2027_v6  ;;  %v1091_v24 = vpop.f32.mrb[7].mxu1 }
 0x267   :  { %1257 = vst.msk [vmem:[%s2196_s7 + $0x20] sm:$0xff] %vm1252_vm1, %v1224_v21  ;;  %v1092_v25 = vadd.f32 %v2027_v6, %v1091_v24 }
 0x268   :  { %v1227_v26 = vmax.f32 %v1097_v23, 0.0 }
 0x269   :  { %v1226_v27 = vmax.f32 %v1092_v25, 0.0  ;;  %v1508_v28 = vpop.f32.mrb[8].mxu1 }
 0x26a   :  { %1260 = vst.msk [vmem:[%s2196_s7 + $0x38] sm:$0xff] %vm1252_vm1, %v1227_v26  ;;  %v1107_v29 = vadd.f32 %v1508_v28, %v2027_v6  ;;  %v1101_v47 = vpop.f32.mrb[9].mxu1 }
 0x26b   :  { %1259 = vst.msk [vmem:[%s2196_s7 + $0x30] sm:$0xff] %vm1252_vm1, %v1226_v27  ;;  %v1102_v31 = vadd.f32 %v2027_v6, %v1101_v47 }
 0x26c   :  { %v1229_v32 = vmax.f32 %v1107_v29, 0.0 }
 0x26d   :  { %v1228_v33 = vmax.f32 %v1102_v31, 0.0 }
 0x26e   :  { %1262 = vst.msk [vmem:[%s2196_s7 + $0x48] sm:$0xff] %vm1252_vm1, %v1229_v32 }
 0x26f   :  { %1261 = vst.msk [vmem:[%s2196_s7 + $0x40] sm:$0xff] %vm1252_vm1, %v1228_v33 }
 0x273   :  { %v1511_v43 = vpop.f32.mrb[10].mxu1 }
 0x274   :  { %v1117_v53 = vadd.f32 %v1511_v43, %v2027_v6  ;;  %v1111_v35 = vpop.f32.mrb[11].mxu1 }
 0x275   :  { %v1112_v36 = vadd.f32 %v2027_v6, %v1111_v35 }
 0x276   :  { %v1231_v37 = vmax.f32 %v1117_v53, 0.0 }
 0x277   :  { %v1230_v38 = vmax.f32 %v1112_v36, 0.0 }
 0x278   :  { %1264 = vst.msk [vmem:[%s2196_s7 + $0x58] sm:$0xff] %vm1252_vm1, %v1231_v37 }
 0x279   :  { %1263 = vst.msk [vmem:[%s2196_s7 + $0x50] sm:$0xff] %vm1252_vm1, %v1230_v38 }
 0x281   :  { %v1514_v56 = vpop.f32.mrb[12].mxu1 }
 0x282   :  { %v1127_v52 = vadd.f32 %v1514_v56, %v2027_v6  ;;  %v1121_v41 = vpop.f32.mrb[13].mxu1 }
 0x283   :  { %v1122_v30 = vadd.f32 %v2027_v6, %v1121_v41 }
 0x284   :  { %v1233_v39 = vmax.f32 %v1127_v52, 0.0 }
 0x285   :  { %v1232_v42 = vmax.f32 %v1122_v30, 0.0 }
 0x286   :  { %1266 = vst.msk [vmem:[%s2196_s7 + $0x68] sm:$0xff] %vm1252_vm1, %v1233_v39 }
 0x287   :  { %1265 = vst.msk [vmem:[%s2196_s7 + $0x60] sm:$0xff] %vm1252_vm1, %v1232_v42 }
 0x28b   :  { %v1517_v44 = vpop.f32.mrb[14].mxu1 }
 0x28c   :  { %v1137_v46 = vadd.f32 %v1517_v44, %v2027_v6  ;;  %v1131_v48 = vpop.f32.mrb[15].mxu1 }
 0x28d   :  { %v1132_v49 = vadd.f32 %v2027_v6, %v1131_v48 }
 0x28e   :  { %v1235_v51 = vmax.f32 %v1137_v46, 0.0 }
 0x28f   :  { %v1234_v54 = vmax.f32 %v1132_v49, 0.0 }
 0x290   :  { %1268 = vst.msk [vmem:[%s2196_s7 + $0x78] sm:$0xff] %vm1252_vm1, %v1235_v51 }
 0x291   :  { %1267 = vst.msk [vmem:[%s2196_s7 + $0x70] sm:$0xff] %vm1252_vm1, %v1234_v54 }
 0x299   :  { %v1520_v55 = vpop.f32.mrb[16].mxu1 }
 0x29a   :  { %v1147_v57 = vadd.f32 %v1520_v55, %v2027_v6  ;;  %v1141_v58 = vpop.f32.mrb[17].mxu1 }
 0x29b   :  { %v1142_v59 = vadd.f32 %v2027_v6, %v1141_v58 }
 0x29c   :  { %v1237_v60 = vmax.f32 %v1147_v57, 0.0 }
 0x29d   :  { %v1236_v61 = vmax.f32 %v1142_v59, 0.0 }
 0x29e   :  { %1270 = vst.msk [vmem:[%s2196_s7 + $0x88] sm:$0xff] %vm1252_vm1, %v1237_v60 }
 0x29f   :  { %1269 = vst.msk [vmem:[%s2196_s7 + $0x80] sm:$0xff] %vm1252_vm1, %v1236_v61 }
 0x2a3   :  { %v1523_v62 = vpop.f32.mrb[18].mxu1 }
 0x2a4   :  { %v1157_v63 = vadd.f32 %v1523_v62, %v2027_v6  ;;  %v1151_v7 = vpop.f32.mrb[19].mxu1 }
 0x2a5   :  { %v1152_v1 = vadd.f32 %v2027_v6, %v1151_v7 }
 0x2a6   :  { %v1239_v2 = vmax.f32 %v1157_v63, 0.0 }
 0x2a7   :  { %v1238_v3 = vmax.f32 %v1152_v1, 0.0 }
 0x2a8   :  { %1272 = vst.msk [vmem:[%s2196_s7 + $0x98] sm:$0xff] %vm1252_vm1, %v1239_v2 }
 0x2a9   :  { %1271 = vst.msk [vmem:[%s2196_s7 + $0x90] sm:$0xff] %vm1252_vm1, %v1238_v3 }
 0x2b1   :  { %v1526_v4 = vpop.f32.mrb[20].mxu1 }
 0x2b2   :  { %v1167_v50 = vadd.f32 %v1526_v4, %v2027_v6  ;;  %v1161_v5 = vpop.f32.mrb[21].mxu1 }
 0x2b3   :  { %v1162_v45 = vadd.f32 %v2027_v6, %v1161_v5 }
 0x2b4   :  { %v1241_v40 = vmax.f32 %v1167_v50, 0.0 }
 0x2b5   :  { %v1240_v8 = vmax.f32 %v1162_v45, 0.0 }
 0x2b6   :  { %1274 = vst.msk [vmem:[%s2196_s7 + $0xa8] sm:$0xff] %vm1252_vm1, %v1241_v40 }
 0x2b7   :  { %1273 = vst.msk [vmem:[%s2196_s7 + $0xa0] sm:$0xff] %vm1252_vm1, %v1240_v8 }
 0x2bb   :  { %v1529_v0 = vpop.f32.mrb[22].mxu1 }
 0x2bc   :  { %v1177_v9 = vadd.f32 %v1529_v0, %v2027_v6  ;;  %v1171_v34 = vpop.f32.mrb[23].mxu1 }
 0x2bd   :  { %v1172_v10 = vadd.f32 %v2027_v6, %v1171_v34 }
 0x2be   :  { %v1243_v11 = vmax.f32 %v1177_v9, 0.0 }
 0x2bf   :  { %v1242_v12 = vmax.f32 %v1172_v10, 0.0 }
 0x2c0   :  { %1276 = vst.msk [vmem:[%s2196_s7 + $0xb8] sm:$0xff] %vm1252_vm1, %v1243_v11 }
 0x2c1   :  { %1275 = vst.msk [vmem:[%s2196_s7 + $0xb0] sm:$0xff] %vm1252_vm1, %v1242_v12 }
 0x2c9   :  { %v1532_v13 = vpop.f32.mrb[24].mxu1 }
 0x2ca   :  { %v1187_v14 = vadd.f32 %v1532_v13, %v2027_v6  ;;  %v1181_v15 = vpop.f32.mrb[25].mxu1 }
 0x2cb   :  { %v1182_v16 = vadd.f32 %v2027_v6, %v1181_v15 }
 0x2cc   :  { %v1245_v17 = vmax.f32 %v1187_v14, 0.0 }
 0x2cd   :  { %v1244_v18 = vmax.f32 %v1182_v16, 0.0 }
 0x2ce   :  { %1278 = vst.msk [vmem:[%s2196_s7 + $0xc8] sm:$0xff] %vm1252_vm1, %v1245_v17 }
 0x2cf   :  { %1277 = vst.msk [vmem:[%s2196_s7 + $0xc0] sm:$0xff] %vm1252_vm1, %v1244_v18 }
 0x2d3   :  { %v1535_v19 = vpop.f32.mrb[26].mxu1 }
 0x2d4   :  { %v1197_v20 = vadd.f32 %v1535_v19, %v2027_v6  ;;  %v1191_v21 = vpop.f32.mrb[27].mxu1 }
 0x2d5   :  { %v1192_v22 = vadd.f32 %v2027_v6, %v1191_v21 }
 0x2d6   :  { %v1247_v23 = vmax.f32 %v1197_v20, 0.0 }
 0x2d7   :  { %v1246_v24 = vmax.f32 %v1192_v22, 0.0 }
 0x2d8   :  { %1280 = vst.msk [vmem:[%s2196_s7 + $0xd8] sm:$0xff] %vm1252_vm1, %v1247_v23 }
 0x2d9   :  { %1279 = vst.msk [vmem:[%s2196_s7 + $0xd0] sm:$0xff] %vm1252_vm1, %v1246_v24 }
 0x2e1   :  { %v1538_v25 = vpop.f32.mrb[28].mxu1 }
 0x2e2   :  { %v1207_v26 = vadd.f32 %v1538_v25, %v2027_v6  ;;  %v1201_v27 = vpop.f32.mrb[29].mxu1 }
 0x2e3   :  { %v1202_v28 = vadd.f32 %v2027_v6, %v1201_v27 }
 0x2e4   :  { %v1249_v29 = vmax.f32 %v1207_v26, 0.0 }
 0x2e5   :  { %v1248_v47 = vmax.f32 %v1202_v28, 0.0 }
 0x2e6   :  { %1282 = vst.msk [vmem:[%s2196_s7 + $0xe8] sm:$0xff] %vm1252_vm1, %v1249_v29 }
 0x2e7   :  { %1281 = vst.msk [vmem:[%s2196_s7 + $0xe0] sm:$0xff] %vm1252_vm1, %v1248_v47 }
 0x2eb   :  { %v1541_v31 = vpop.f32.mrb[30].mxu1 }
 0x2ec   :  { %v1217_v32 = vadd.f32 %v1541_v31, %v2027_v6  ;;  %v1211_v33 = vpop.f32.mrb[31].mxu1 }
 0x2ed   :  { %v1212_v43 = vadd.f32 %v2027_v6, %v1211_v33 }
 0x2ee   :  { %v1251_v53 = vmax.f32 %v1217_v32, 0.0 }
 0x2ef   :  { %v1250_v35 = vmax.f32 %v1212_v43, 0.0 }
 0x2f0   :  { %1284 = vst.msk [vmem:[%s2196_s7 + $0xf8] sm:$0xff] %vm1252_vm1, %v1251_v53 }
 0x2f1   :  { %1283 = vst.msk [vmem:[%s2196_s7 + $0xf0] sm:$0xff] %vm1252_vm1, %v1250_v35 }

</bundles_post_ra>
